<compile_context>
chip_gen: v7x
topology: tpu7x:2x2x1
jax: 0.10.0
libtpu: 0.0.40
codegen_flags: <defaults>
</compile_context>

<pallas_src>
import functools

import jax
import jax.numpy as jnp
from jax import lax
from jax.experimental import pallas as pl
from jax.experimental.pallas import tpu as pltpu


def _round_up(x: int, m: int) -> int:
    return ((x + m - 1) // m) * m


def _pick_tile(dim: int, cap: int, candidates):
    """Return (tile, padded_dim).

    Prefers the full dim when it fits in one tile (full-extent blocks are
    exempt from the (8,128) divisibility rule), then the largest candidate
    that divides the dim exactly (no wrapper-side padding copy), and only as
    a last resort pads the dim up to a multiple of `cap`.
    """
    if dim <= cap:
        return dim, dim
    for c in candidates:
        if dim % c == 0:
            return c, dim
    return cap, _round_up(dim, cap)


def linear_kernel(x_ref, w_ref, b_ref, o_ref):
    # x_ref: (tm, tk)   tile of X
    # w_ref: (tn, tk)   tile of W in torch layout [dim_out, dim_in]
    # b_ref: (1, tn)    bias slice for this dim_out tile
    # o_ref: (tm, tn)   f32 output tile; doubles as the K-axis accumulator
    #                   (its index_map ignores k, so it stays resident).
    k = pl.program_id(2)

    @pl.when(k == 0)
    def _():
        # Initialize the resident output tile with the broadcast bias.
        o_ref[...] = jnp.broadcast_to(b_ref[...], o_ref.shape)

    # X[tm, tk] contracted with W[tn, tk] on its last dim == X @ W.T tile.
    o_ref[...] += lax.dot_general(
        x_ref[...],
        w_ref[...],
        dimension_numbers=(((1,), (1,)), ((), ())),
        preferred_element_type=jnp.float32,
    )


@functools.partial(jax.jit, static_argnames=("tm", "tn", "tk"))
def linear_forward(x, weights, bias, *, tm=None, tn=None, tk=None):
    """Y = x @ weights.T + bias via a tiled Pallas TPU matmul kernel.

    x:       [N, dim_in]       float32
    weights: [dim_out, dim_in] float32  (torch layout, used as-is)
    bias:    [dim_out]         float32
    returns: [N, dim_out]      float32
    """
    N, K = x.shape
    dim_out, K_w = weights.shape
    assert K == K_w, (K, K_w)

    # ---- tile selection (prefer full dims or exact divisors: no padding) ----
    if tm is None:
        tm, Mp = _pick_tile(N, 512, (512, 384, 256, 192, 128, 64))
    else:
        assert tm == N or tm % 8 == 0, "tm must be a multiple of 8 or equal N"
        Mp = _round_up(N, tm)
    if tn is None:
        tn, Op = _pick_tile(dim_out, 512, (512, 384, 256, 128))
    else:
        assert tn == dim_out or tn % 128 == 0, "tn must be a multiple of 128 or dim_out"
        Op = _round_up(dim_out, tn)
    if tk is None:
        tk, Kp = _pick_tile(K, 2048, (2048, 1536, 1024, 768, 512, 384, 256, 128))
    else:
        assert tk == K or tk % 128 == 0, "tk must be a multiple of 128 or K"
        Kp = _round_up(K, tk)

    # v7x has 2 TensorCores sharded over the parallel grid axes; avoid a
    # degenerate 1x1 parallel grid when a tile can legally be split in two.
    if (Mp // tm) * (Op // tn) < 2:
        if tn % 256 == 0:          # halved tn stays a multiple of 128
            tn //= 2
        elif tm % 16 == 0:         # halved tm stays a multiple of 8
            tm //= 2

    # ---- padding only when the shape forces it (fallback path) ----
    x_p = x
    if Mp != N or Kp != K:
        x_p = jnp.pad(x, ((0, Mp - N), (0, Kp - K)))
    w_p = weights
    if Op != dim_out or Kp != K:
        w_p = jnp.pad(weights, ((0, Op - dim_out), (0, Kp - K)))
    b_p = bias.reshape(1, dim_out)
    if Op != dim_out:
        b_p = jnp.pad(b_p, ((0, 0), (0, Op - dim_out)))

    grid = (Mp // tm, Op // tn, Kp // tk)

    # Double-buffered per-tile VMEM footprint (f32) + headroom, capped at
    # 48 MiB so it is safe on v7x (64 MiB per-TC VMEM) and fine on v5e/v6e.
    tile_bytes = 4 * (2 * tm * tk + 2 * tn * tk + 2 * tn + 2 * tm * tn)
    vmem_limit = int(min(max(tile_bytes + (4 << 20), 16 << 20), 48 << 20))

    cost = pl.CostEstimate(
        flops=2 * Mp * Kp * Op,
        transcendentals=0,
        bytes_accessed=4 * (
            (Op // tn) * Mp * Kp      # X re-read once per output-column tile
            + (Mp // tm) * Kp * Op    # W re-read once per output-row tile
            + Mp * Op                 # output write
            + Op                      # bias
        ),
    )

    out_p = pl.pallas_call(
        linear_kernel,
        out_shape=jax.ShapeDtypeStruct((Mp, Op), jnp.float32),
        grid_spec=pltpu.PrefetchScalarGridSpec(
            num_scalar_prefetch=0,
            grid=grid,
            in_specs=[
                pl.BlockSpec((tm, tk), lambda i, j, k: (i, k)),  # X tile
                pl.BlockSpec((tn, tk), lambda i, j, k: (j, k)),  # W tile (torch layout)
                pl.BlockSpec((1, tn), lambda i, j, k: (0, j)),   # bias slice
            ],
            out_specs=pl.BlockSpec((tm, tn), lambda i, j, k: (i, j)),
        ),
        compiler_params=pltpu.CompilerParams(
            dimension_semantics=("parallel", "parallel", "arbitrary"),
            vmem_limit_bytes=vmem_limit,
        ),
        cost_estimate=cost,
    )(x_p, w_p, b_p)

    if Mp == N and Op == dim_out:
        return out_p
    return out_p[:N, :dim_out]


if __name__ == "__main__":
    # Deterministic synthetic parameters / inputs (matches nn.Parameter init:
    # weights ~ randn * 0.1, bias = zeros).
    N, dim_in, dim_out = 16, 128, 64
    key = jax.random.PRNGKey(0)
    kx, kw = jax.random.split(key)
    x = jax.random.normal(kx, (N, dim_in), dtype=jnp.float32)
    weights = jax.random.normal(kw, (dim_out, dim_in), dtype=jnp.float32) * 0.1
    bias = jnp.zeros((dim_out,), dtype=jnp.float32)

    y = jax.block_until_ready(linear_forward(x, weights, bias))

    # Correctness check against plain JAX reference (torch.mm(X, W.T) + b).
    y_ref = x @ weights.T + bias
    assert y.shape == (N, dim_out)
    assert jnp.allclose(y, y_ref, atol=1e-4, rtol=1e-4), (
        float(jnp.max(jnp.abs(y - y_ref)))
    )

    print("KERNEL_OK")
</pallas_src>

<mosaic_0001>
module attributes {stable_mosaic.version = 11 : i64} {
  func.func @linear_kernel(%arg0: i32, %arg1: i32, %arg2: i32, %arg3: memref<8x128xf32, #tpu.memory_space<vmem>>, %arg4: memref<64x128xf32, #tpu.memory_space<vmem>>, %arg5: memref<1x64xf32, #tpu.memory_space<vmem>>, %arg6: memref<8x64xf32, #tpu.memory_space<vmem>>) attributes {dimension_semantics = [#tpu.dimension_semantics<parallel>, #tpu.dimension_semantics<parallel>, #tpu.dimension_semantics<arbitrary>], iteration_bounds = array<i64: 2, 1, 1>, scalar_prefetch = 0 : i64, scratch_operands = 0 : i64, tpu.core_type = #tpu.core_type<tc>, window_params = [{transform_indices = @transform_0, window_bounds = array<i64: 8, 128>}, {transform_indices = @transform_1, window_bounds = array<i64: 64, 128>}, {transform_indices = @transform_2, window_bounds = array<i64: 1, 64>}, {transform_indices = @transform_3, window_bounds = array<i64: 8, 64>}]} {
    %c0_i32 = arith.constant 0 : i32
    %0 = arith.cmpi eq, %arg2, %c0_i32 : i32
    %1 = arith.extui %0 : i1 to i32
    %c0_i32_0 = arith.constant 0 : i32
    %2 = arith.cmpi ne, %1, %c0_i32_0 : i32
    scf.if %2 {
      %c0_8 = arith.constant 0 : index
      %c0_9 = arith.constant 0 : index
      %9 = vector.load %arg5[%c0_8, %c0_9] : memref<1x64xf32, #tpu.memory_space<vmem>>, vector<1x64xf32>
      %10 = vector.shape_cast %9 : vector<1x64xf32> to vector<1x64xf32>
      %11 = vector.broadcast %10 : vector<1x64xf32> to vector<8x64xf32>
      %c0_10 = arith.constant 0 : index
      %c0_11 = arith.constant 0 : index
      %12 = vector.load %arg6[%c0_10, %c0_11] : memref<8x64xf32, #tpu.memory_space<vmem>>, vector<8x64xf32>
      tpu.vector_store %arg6[%c0_10, %c0_11], %11 {strides = array<i32>} : memref<8x64xf32, #tpu.memory_space<vmem>>, vector<8x64xf32>,
    } else {
    }
    %c0 = arith.constant 0 : index
    %c0_1 = arith.constant 0 : index
    %3 = vector.load %arg6[%c0, %c0_1] : memref<8x64xf32, #tpu.memory_space<vmem>>, vector<8x64xf32>
    %c0_2 = arith.constant 0 : index
    %c0_3 = arith.constant 0 : index
    %4 = vector.load %arg3[%c0_2, %c0_3] : memref<8x128xf32, #tpu.memory_space<vmem>>, vector<8x128xf32>
    %c0_4 = arith.constant 0 : index
    %c0_5 = arith.constant 0 : index
    %5 = vector.load %arg4[%c0_4, %c0_5] : memref<64x128xf32, #tpu.memory_space<vmem>>, vector<64x128xf32>
    %cst = arith.constant dense<0.000000e+00> : vector<8x64xf32>
    %6 = tpu.matmul %4, %5, %cst {dimension_numbers = #tpu.dot_dimension_numbers<[1], [1], [0], [0], [0, 0, 1, 0], [], []>} : vector<8x128xf32>, vector<64x128xf32>, vector<8x64xf32> -> vector<8x64xf32>
    %7 = arith.addf %3, %6 : vector<8x64xf32>
    %c0_6 = arith.constant 0 : index
    %c0_7 = arith.constant 0 : index
    %8 = vector.load %arg6[%c0_6, %c0_7] : memref<8x64xf32, #tpu.memory_space<vmem>>, vector<8x64xf32>
    tpu.vector_store %arg6[%c0_6, %c0_7], %7 {strides = array<i32>} : memref<8x64xf32, #tpu.memory_space<vmem>>, vector<8x64xf32>,
    return
  }
  func.func @transform_0(%arg0: i32, %arg1: i32, %arg2: i32) -> (i32, i32) {
    %c0_i32 = arith.constant 0 : i32
    return %arg0, %arg2 : i32, i32
  }
  func.func @transform_1(%arg0: i32, %arg1: i32, %arg2: i32) -> (i32, i32) {
    %c0_i32 = arith.constant 0 : i32
    return %arg1, %arg2 : i32, i32
  }
  func.func @transform_2(%arg0: i32, %arg1: i32, %arg2: i32) -> (i32, i32) {
    %c0_i32 = arith.constant 0 : i32
    %c0_i32_0 = arith.constant 0 : i32
    return %c0_i32, %arg1 : i32, i32
  }
  func.func @transform_3(%arg0: i32, %arg1: i32, %arg2: i32) -> (i32, i32) {
    %c0_i32 = arith.constant 0 : i32
    return %arg0, %arg1 : i32, i32
  }
}

</mosaic_0001>

<bundles_post_ra>
// kernel: linear_forward.1
= control target key start
LH: loop header
LB: loop body
LE: loop exit
PB: predicated region body
PF: predicated region fallthrough
CT: control target
= control target key end

     0   :  { %8 = vsyncpa [#allocation3], 0  ;;  %s1002_s0 = inlined_call_operand.hbm [shape: f32[16,128], index: 0, kind: input, shape index: {}]   ;;  %s1003_s1 = inlined_call_operand.hbm [shape: f32[64,128], index: 1, kind: input, shape index: {}]   ;;  %s1004_s2 = inlined_call_operand.vmem [shape: f32[1,64], index: 2, kind: input, shape index: {}]   ;;  %s1005_s3 = inlined_call_operand.hbm [shape: f32[16,64], index: 3, kind: output, shape index: {}]  }
   0x1   :  { %10 = vsyncpa [#allocation3 + $0x1], 0 }
   0x2   :  { %11 = vsyncpa [#allocation6], 0 }
   0x3   :  { %12 = vsyncpa [#allocation4], 0 }
   0x4   :  { %14 = vsyncpa [#allocation4 + $0x1], 0  ;;  %s780_s12 = smov 0   ;;  %s782_s13 = smov 0  }
   0x5   :  { %s784_s14 = smov 0   ;;  %s786_s15 = smov 0  }
   0x6   :  { %s788_s16 = smov 0   ;;  %s790_s17 = smov 0  }
   0x7 LB: > { %s471_s18 = sadd.s32 4294967295, %s750_s17   ;;  %s472_s19 = sadd.s32 4294967294, %s750_s17   ;;  %s750_s17 = sphi %s790_s17, %s20_s17   ;;  %s746_s16 = sphi %s788_s16, %s1029_s16   ;;  %s742_s15 = sphi %s786_s15, %s1028_s15   ;;  %s738_s14 = sphi %s784_s14, %s1027_s14   ;;  %s734_s13 = sphi %s782_s13, %s1026_s13   ;;  %s730_s12 = sphi %s780_s12, %s1025_s12  }
   0x8   : > { %p61_p0 = scmp.ne.s32.totalorder %s734_s13, %s730_s12  ;;  %p814_p1 = scmp.eq.s32.totalorder %s471_s18, 0 }
   0x9   : > { %p818_p2 = scmp.eq.s32.totalorder %s471_s18, 1  ;;  %p147_p3 = scmp.eq.s32.totalorder %s472_s19, 1 }
   0xa   : > { %s1010_s20 = scalar_select %p814_p1, 1, 0 }
   0xb   : > { %s1011_s21 = scalar_select %p818_p2, 1, 0 }
   0xc   : > { %p824_p4 = por %p814_p1, %p61_p0  ;;  %p473_p5 = scmp.ge.s32.totalorder %s750_s17, 1 }
   0xd   : > { %p829_p6 = por %p147_p3, %p61_p0  ;;  %p154_p7 = scmp.lt.s32.totalorder %s750_s17, 3 }
   0xe   : > { %s1012_s22 = scalar_select %p824_p4, 1, 0 }
   0xf   : > { %s1013_s23 = scalar_select %p829_p6, 1, 0 }
  0x10   : > { %p834_p8 = pnand %p473_p5, %p154_p7  ;;  %s752_s25 = smov [#allocation5]  }
  0x11   : > { %s170_s26 = sshll.u32 %s752_s25, 4  ;;  %s39_s28 = sadd.s32 1, %s746_s16  ;;  %s171_s26 = int_to_ptr.vmem [resolvable:$true] %s170_s26 }
  0x12   : > { %s1014_s24 = scalar_select %p834_p8, 1, 0 }
  0x13   : > { %p536_p9 = pneg %p834_p8  ;;  %s606_s4 = scalar_lea.hbm %s1003_s1, 1024 }
  0x14   : > { %p607_p12 = scmp.ne.s32.totalorder %s1003_s1, %s606_s4  ;;  %p613_p5 = scmp.lt.u32.totalorder %s606_s4, %s1003_s1 }
  0x15   : > { %p843_p11 = pnand %p536_p9, %p814_p1 }
  0x17   : > { %p608_p13 = pneg %p843_p11 }
  0x19   : > { %p609_p0 = pnand %p608_p13, %p607_p12 }
  0x1b   : > { %p610_p3 = pneg %p609_p0 }
  0x1d   : > { %p615_p7 = pnand %p613_p5, %p610_p3 }
  0x1f   : > { %618 = shalt.err (!%p615_p7)
}
  0x20   : > { %s619_s9 = scalar_lea.vmem %s171_s26, 1024  ;;  %p627_p1 = scmp.lt.s32.totalorder %s171_s26, %s171_s26 }
  0x21   : > { %p620_p9 = scmp.ne.s32.totalorder %s171_s26, %s619_s9  ;;  %p628_p4 = scmp.lt.s32.totalorder %s619_s9, %s619_s9 }
  0x23   : > { %p622_p10 = pnand %p620_p9, %p608_p13  ;;  %p629_p8 = por %p628_p4, %p627_p1 }
  0x25   : > { %p623_p6 = pneg %p622_p10 }
  0x27   : > { %p630_p2 = pnand %p629_p8, %p623_p6 }
  0x29   : > { %633 = shalt.err (!%p630_p2)
}
  0x2a   : > { %s753_s10 = smov 128   ;;  %s754_s11 = smov 8  }
  0x2b   : > { %539 = dma.hbm_to_vmem [thread:$0]  (!%p843_p11), %s1003_s1, 1024, %s171_s26, [#allocation6], %s753_s10, %s753_s10, %s754_s11  }
  0x2c   : > { %p41_p1 = scmp.ge.s32.totalorder %s39_s28, 2  ;;  %s48_s25 = sadd.s32 1, %s738_s14 }
  0x2d   : > { %p55_p2 = scmp.ne.s32.totalorder %s738_s14, %s734_s13  ;;  %p56_p4 = scmp.eq.s32.totalorder %s750_s17, 0 }
  0x2e   : > { %s1031_s28 = smov (%p41_p1, %s39_s28), 0  ;;  %p1017_p8 = scmp.ne.s32.totalorder %s1011_s21, 0 }
  0x2f   : > { %p870_p6 = por %p56_p4, %p55_p2  ;;  %s43_s27 = ssub.s32 %s746_s16, %s1031_s28 }
  0x30   : > { %p876_p10 = por %p1017_p8, %p55_p2  ;;  %p549_p12 = scmp.lt.s32.totalorder %s750_s17, 2 }
  0x31   : > { %p46_p11 = scmp.eq.s32.totalorder %s43_s27, 0  ;;  %s190_s26 = sand.u32 1, %s738_s14  }
  0x32   : > { %s477_s4 = sshll.u32 %s190_s26, 3  ;;  %s478_s6 = sshll.u32 %s746_s16, 7 }
  0x33   : > { %s885_s5 = scalar_select %p46_p11, %s738_s14, %s48_s25  }
  0x34   : > { %s891_s9 = scalar_lea.hbm %s1002_s0, %s478_s6  ;;  %s194_s21 = scalar_lea.vmem [#allocation2], %s477_s4 }
  0x35   : > { %s202_s10 = sshll.u32 %s194_s21, 4  ;;  %p897_p13 = pnand %p549_p12, %p870_p6  ;;  %s893_s10 = int_to_ptr.vmem [resolvable:$true] %s202_s10 }
  0x36   : > { %s191_s18 = scalar_lea.sflag [#allocation3], %s190_s26  ;;  %s634_s19 = scalar_lea.hbm %s891_s9, 128 }
  0x37   : > { %p635_p0 = scmp.ne.s32.totalorder %s891_s9, %s634_s19  ;;  %p636_p3 = pneg %p897_p13 }
  0x38   : > { %s639_s4 = scalar_lea.hbm %s1002_s0, 256  ;;  %p640_p9 = scmp.lt.u32.totalorder %s891_s9, %s1002_s0 }
  0x39   : > { %p637_p5 = pnand %p636_p3, %p635_p0  ;;  %p641_p1 = scmp.lt.u32.totalorder %s639_s4, %s634_s19 }
  0x3a   : > { %p643_p4 = scmp.lt.u32.totalorder %s634_s19, %s891_s9 }
  0x3b   : > { %p638_p7 = pneg %p637_p5  ;;  %p642_p2 = por %p641_p1, %p640_p9 }
  0x3d   : > { %p644_p6 = por %p643_p4, %p642_p2 }
  0x3f   : > { %p645_p8 = pnand %p644_p6, %p638_p7 }
  0x41   : > { %648 = shalt.err (!%p645_p8)
}
  0x42   : > { %s649_s26 = scalar_lea.vmem %s893_s10, 128  ;;  %s755_s7 = smov [#allocation2]  }
  0x43   : > { %p650_p12 = scmp.ne.s32.totalorder %s893_s10, %s649_s26  ;;  %s654_s8 = sshll.u32 %s755_s7, 4  ;;  %s655_s8 = int_to_ptr.vmem [resolvable:$false] %s654_s8 }
  0x44   : > { %s656_s21 = scalar_lea.vmem %s655_s8, 256  ;;  %p657_p5 = scmp.lt.s32.totalorder %s893_s10, %s655_s8 }
  0x45   : > { %p652_p11 = pnand %p650_p12, %p636_p3  ;;  %p658_p9 = scmp.lt.s32.totalorder %s656_s21, %s649_s26 }
  0x47   : > { %p653_p0 = pneg %p652_p11  ;;  %p659_p1 = por %p658_p9, %p657_p5 }
  0x49   : > { %p660_p2 = pnand %p659_p1, %p653_p0 }
  0x4b   : > { %663 = shalt.err (!%p660_p2)
}
  0x4c   : > { %543 = dma.hbm_to_vmem [thread:$0]  (!%p897_p13), %s891_s9, 128, %s893_s10, %s191_s18  }
  0x4d   : > { %p1020_p7 = scmp.ne.s32.totalorder %s1014_s24, 0 }
  0x4e   : > { %s929_s19 = sand.u32 (!%p1020_p7), 1, %s734_s13   ;;  %p1021_p3 = scmp.ne.s32.totalorder (!%p1020_p7), %s1012_s22, 0 }
  0x4f   : > { %211 = sbr.rel (%p1020_p7) target bundleno = 353 (0x161), region = 32  ;;  %s480_s25 = sshll.u32 (!%p1020_p7), %s929_s19, 3 }
  0x50   : > { %s214_s27 = scalar_lea.sflag (!%p1020_p7), [#allocation3], %s929_s19  ;;  %s933_s4 = scalar_lea.vmem (!%p1020_p7), [#allocation2], %s480_s25 }
  0x56   : > { %717 = dma.done.wait (%p1021_p3), %s214_s27, 128  }
  0x57   : > { %719 = vsyncadd (%p1021_p3), %s214_s27, 4294967168  ;;  %p1022_p13 = scmp.ne.s32.totalorder %s1010_s20, 0 }
  0x59   : > { %721 = dma.done.wait (%p1022_p13), [#allocation6], 1024  }
  0x5a   : > { %723 = vsyncadd (%p1022_p13), [#allocation6], 4294966272  ;;  %v756_v0 = vmov 0.0|0.0   ;;  %vm757_vm0 = vmmov 0   ;;  %v758_v1 = vmov 0.0   ;;  %v266_v2 = vld [vmem:[#allocation5] sm:$0xff] }
  0x5b   : > { %516 = vmatprep.subr.bf16.mxu0 %v756_v0  ;;  %513 = vmatprep.mubr.msk.f32.mxu0 %vm757_vm0, %v758_v1  ;;  %v267_v3 = vld [vmem:[#allocation5 + $0x8] sm:$0xff]  ;;  %vm262_vm1 = vcmask 523264   ;;  %v483_v5 = vld [vmem:[%s1004_s2] ss:$0 sm:$0xff]  ;;  %v269_v7 = vld [vmem:[#allocation5 + $0x18] sm:$0xff]  ;;  %s246_s20 = scalar_lea.vmem [#allocation7], %s480_s25 }
  0x5c   : > { %v517_v4 = vpack.c.bf16 %v267_v3, %v266_v2  ;;  %v268_v6 = vld [vmem:[#allocation5 + $0x10] sm:$0xff]  ;;  %263 = vst.msk [vmem:[%s246_s20] sm:$0xff] %vm262_vm1, %v483_v5  ;;  %v270_v9 = vld [vmem:[#allocation5 + $0x20] sm:$0xff]  ;;  %v271_v10 = vld [vmem:[#allocation5 + $0x28] sm:$0xff]  ;;  %s485_s22 = sshll.u32 %s742_s15, 7  ;;  %s362_s10 = sshll.u32 %s246_s20, 4  ;;  %s954_s10 = int_to_ptr.vmem [resolvable:$true] %s362_s10 }
  0x5d   : > { %v520_v8 = vpack.c.bf16 %v269_v7, %v268_v6  ;;  %v523_v11 = vpack.c.bf16 %v271_v10, %v270_v9  ;;  %v272_v12 = vld [vmem:[#allocation5 + $0x30] sm:$0xff]  ;;  %v273_v13 = vld [vmem:[#allocation5 + $0x38] sm:$0xff]  ;;  %s952_s29 = scalar_lea.hbm %s1005_s3, %s485_s22  ;;  %s348_s6 = scalar_lea.sflag [#allocation4], %s929_s19 }
  0x5e   : > { %518 = vmatpush3.bf16.xpose.msra.mxu0 %v517_v4  ;;  %v526_v14 = vpack.c.bf16 %v273_v13, %v272_v12  ;;  %v265_v15 = vld [vmem:[%s933_s4] sm:$0xff]  ;;  %s664_s26 = scalar_lea.vmem %s954_s10, 128  ;;  %s759_s15 = smov [#allocation7]  }
  0x5f   : > { %519 = vmatprep.subr.bf16.mxu0 %v756_v0  ;;  %p665_p4 = scmp.ne.s32.totalorder %s954_s10, %s664_s26  ;;  %s668_s7 = sshll.u32 %s759_s15, 4  ;;  %s669_s7 = int_to_ptr.vmem [resolvable:$false] %s668_s7 }
  0x60   : > { %s670_s8 = scalar_lea.vmem %s669_s7, 256  ;;  %p671_p12 = scmp.lt.s32.totalorder %s954_s10, %s669_s7 }
  0x61   : > { %p666_p6 = pnand %p665_p4, %p876_p10  ;;  %p672_p11 = scmp.lt.s32.totalorder %s670_s8, %s664_s26 }
  0x63   : > { %v264_v16 = vld [vmem:[%s246_s20] sm:$0xff]  ;;  %p667_p8 = pneg %p666_p6  ;;  %p673_p0 = por %p672_p11, %p671_p12 }
  0x65   : > { %p674_p5 = pnand %p673_p0, %p667_p8 }
  0x66   : > { %521 = vmatpush3.bf16.xpose.msra.mxu0 %v520_v8 }
  0x67   : > { %522 = vmatprep.subr.bf16.mxu0 %v756_v0 }
  0x6e   : > { %524 = vmatpush3.bf16.xpose.msra.mxu0 %v523_v11 }
  0x6f   : > { %525 = vmatprep.subr.bf16.mxu0 %v756_v0 }
  0x76   : > { %527 = vmatpush3.bf16.xpose.msra.mxu0 %v526_v14 }
  0x7d   : > { %514 = vmatmul.mubr.f32.vlgmr.msra.gmra.mrb[0].mxu0 %v265_v15 }
 0x150   : > { %v340_v17 = vpop.f32.mrb[0].mxu0 }
 0x151   : > { %v344_v18 = vadd.f32 %v340_v17, %v264_v16  ;;  %v515_v19 = vpop.f32.mrb[1].mxu0 }
 0x153   : > { %346 = vst.msk [vmem:[%s246_s20] sm:$0xff] %vm262_vm1, %v344_v18 }
 0x154   : > { %677 = shalt.err (!%p674_p5)
}
 0x155   : > { %s678_s21 = scalar_lea.hbm %s952_s29, 128  ;;  %s682_s27 = scalar_lea.hbm %s1005_s3, 256 }
 0x156   : > { %p679_p9 = scmp.ne.s32.totalorder %s952_s29, %s678_s21  ;;  %p683_p7 = scmp.lt.u32.totalorder %s952_s29, %s1005_s3 }
 0x157   : > { %p684_p3 = scmp.lt.u32.totalorder %s682_s27, %s678_s21  ;;  %p686_p4 = scmp.lt.u32.totalorder %s678_s21, %s952_s29 }
 0x158   : > { %p680_p1 = pnand %p679_p9, %p876_p10 }
 0x159   : > { %p685_p13 = por %p684_p3, %p683_p7 }
 0x15a   : > { %p681_p2 = pneg %p680_p1 }
 0x15b   : > { %p687_p6 = por %p686_p4, %p685_p13 }
 0x15d   : > { %p688_p8 = pnand %p687_p6, %p681_p2 }
 0x15f   : > { %691 = shalt.err (!%p688_p8)
}
 0x160   : > { %534 = dma.vmem_to_hbm [thread:$0]  (%p876_p10), %s954_s10, 128, %s952_s29, %s348_s6  }
 0x161 PF: > { %s374_s9 = sand.u32 1, %s730_s12   ;;  %p1023_p12 = scmp.ne.s32.totalorder %s1013_s23, 0 }
 0x162   : > { %p1024_p11 = scmp.ge.s32.totalorder %s750_s17, 2  ;;  %s375_s20 = scalar_lea.sflag [#allocation4], %s374_s9 }
 0x164   : > { %p545_p0 = pnand %p1024_p11, %p1023_p12 }
 0x166   : > { %725 = dma.done.wait (!%p545_p0), %s375_s20, 128  }
 0x167   : > { %727 = vsyncadd (!%p545_p0), %s375_s20, 4294967168  ;;  %s20_s17 = sadd.s32 1, %s750_s17   ;;  %s1025_s12 = smov %s734_s13 }
 0x168   : > { %p17_p5 = scmp.ge.s32.totalorder %s20_s17, 4   ;;  %s1026_s13 = smov %s738_s14 }
 0x169   : > { %s1027_s14 = smov %s885_s5  ;;  %s1028_s15 = smov %s746_s16 }
 0x16a   : > { %s1029_s16 = smov %s1031_s28  ;;  %19 = sbr.rel (!%p17_p5) target bundleno = 7 (0x7), region = 89 }
 0x171   :  { %380 = vsyncpa [#allocation3], 1 }
 0x172   :  { %382 = vsyncpa [#allocation3 + $0x1], 1 }
 0x173   :  { %383 = vsyncpa [#allocation6], 1 }
 0x174   :  { %384 = vsyncpa [#allocation4], 1 }
 0x175   :  { %386 = vsyncpa [#allocation4 + $0x1], 1 }

</bundles_post_ra>
